<compile_context>
chip_gen: v5e
topology: v5e:2x2
jax: 0.10.0
libtpu: 0.0.40
codegen_flags: <defaults>
</compile_context>

<pallas_src>
import functools

import jax
import jax.numpy as jnp
from jax.experimental import pallas as pl
from jax.experimental.pallas import tpu as pltpu


def _round_up(x, m):
    return (x + m - 1) // m * m


def _vmem_limit(block_bytes):
    # Block footprint x2 (double buffering) x2 headroom, clamped to sane bounds
    # (well below v7x's 64 MiB physical VMEM).
    return int(min(max(4 * block_bytes + (1 << 20), 4 << 20), 48 << 20))


def conv_stats_kernel(xs_ref, w_ref, conv_ref, sum_ref, sumsq_ref):
    """Per image: conv(4x4, stride 2) as bf16 MXU dots + per-channel sum / sum-of-squares.

    xs_ref   : (1, OH+1, OW, 8*IC) bf16  space-to-depth repacked, reflect-padded input
    w_ref    : (2, 8*IC, OCp)      bf16  per-H-phase flattened conv weights
    conv_ref : (1, OH, OW, OCp)    f32   raw conv output (pre-BN)
    sum_ref  : (1, 1, OCp)         f32   per-image per-channel sum
    sumsq_ref: (1, 1, OCp)         f32   per-image per-channel sum of squares
    """
    oh = conv_ref.shape[1]
    ocp = conv_ref.shape[3]
    w0 = w_ref[0]                       # (8*IC, OCp) bf16, H-phase a=0
    w1 = w_ref[1]                       # (8*IC, OCp) bf16, H-phase a=1
    s_acc = jnp.zeros((1, ocp), jnp.float32)
    ss_acc = jnp.zeros((1, ocp), jnp.float32)
    # Static loop over output rows; every load/store below is tile-aligned.
    for r in range(oh):
        x0 = xs_ref[0, r, :, :]         # (OW, 8*IC) bf16
        x1 = xs_ref[0, r + 1, :, :]     # (OW, 8*IC) bf16
        acc = jnp.dot(x0, w0, preferred_element_type=jnp.float32)
        acc = acc + jnp.dot(x1, w1, preferred_element_type=jnp.float32)
        conv_ref[0, r, :, :] = acc      # (OW, OCp) f32, lane-dense store
        s_acc = s_acc + jnp.sum(acc, axis=0, keepdims=True)
        ss_acc = ss_acc + jnp.sum(acc * acc, axis=0, keepdims=True)
    sum_ref[0, :, :] = s_acc
    sumsq_ref[0, :, :] = ss_acc


def bn_act_kernel(conv_ref, scale_ref, bias_ref, o_ref, *, negative_slope):
    """Folded BatchNorm (y = conv*scale + bias) fused with ReLU / LeakyReLU(0.2)."""
    y = conv_ref[...] * scale_ref[...] + bias_ref[...]
    if negative_slope == 0.0:           # static (trace-time) branch
        y = jnp.maximum(y, 0.0)
    else:
        y = jnp.where(y > 0, y, negative_slope * y)
    o_ref[...] = y.astype(o_ref.dtype)


def block_forward(x_nchw, weight, gamma, beta, *, act="relu", use_dropout=False, eps=1e-5):
    """Forward pass of `Block` (down=True). x_nchw: (N, IC, H, W), weight: (OC, IC, 4, 4)."""
    N, IC, H, W = x_nchw.shape
    OC = weight.shape[0]
    KH = KW = 4
    S = 2
    OH, OW = H // S, W // S
    HQ = OH + 1
    C8 = 2 * KW * IC                    # flattened (H-phase p, tap t, ic) = 8*IC
    OCp = _round_up(OC, 128)            # lane-dense output channels

    # ---- glue (all ~input-sized; no im2col blow-up): NHWC + reflect pad + repack ----
    x = jnp.transpose(x_nchw, (0, 2, 3, 1))                              # (N, H, W, IC)
    xpad = jnp.pad(x, ((0, 0), (1, 1), (1, 1), (0, 0)), mode="reflect")  # (N, H+2, W+2, IC)
    # xs[n, i, j, p, t, c] = xpad[n, 2i+p, 2j+t, c]
    cols = [xpad[:, :, t:t + S * OW:S, :] for t in range(KW)]            # 4 x (N, H+2, OW, IC)
    xs = jnp.stack(cols, axis=3)                                         # (N, H+2, OW, 4, IC)
    xs = xs.reshape(N, HQ, 2, OW, KW, IC).transpose(0, 1, 3, 2, 4, 5)    # (N, HQ, OW, 2, 4, IC)
    xs = xs.reshape(N, HQ, OW, C8).astype(jnp.bfloat16)

    # Weights (OC, IC, KH, KW) -> per-H-phase (2, 8*IC, OCp), row order (p, t, ic).
    wt = jnp.transpose(weight, (2, 3, 1, 0))                             # (KH, KW, IC, OC)
    w_r = wt.reshape(2, 2, KW, IC, OC).reshape(2, C8, OC)                # (2, 8*IC, OC)
    w_r = jnp.pad(w_r, ((0, 0), (0, 0), (0, OCp - OC))).astype(jnp.bfloat16)

    # ---- pass 1: conv (bf16 x bf16 -> f32 on MXU) + per-image BN partial stats ----
    blk1_bytes = (HQ * OW * C8 * 2 + 2 * C8 * OCp * 2
                  + OH * OW * OCp * 4 + 2 * OCp * 4)
    conv, psum, psumsq = pl.pallas_call(
        conv_stats_kernel,
        out_shape=(jax.ShapeDtypeStruct((N, OH, OW, OCp), jnp.float32),
                   jax.ShapeDtypeStruct((N, 1, OCp), jnp.float32),
                   jax.ShapeDtypeStruct((N, 1, OCp), jnp.float32)),
        grid=(N,),
        in_specs=[
            pl.BlockSpec((1, HQ, OW, C8), lambda n: (n, 0, 0, 0)),
            pl.BlockSpec((2, C8, OCp), lambda n: (0, 0, 0)),
        ],
        out_specs=(
            pl.BlockSpec((1, OH, OW, OCp), lambda n: (n, 0, 0, 0)),
            pl.BlockSpec((1, 1, OCp), lambda n: (n, 0, 0)),
            pl.BlockSpec((1, 1, OCp), lambda n: (n, 0, 0)),
        ),
        compiler_params=pltpu.CompilerParams(
            dimension_semantics=("parallel",),
            vmem_limit_bytes=_vmem_limit(blk1_bytes)),
    )(xs, w_r)

    # ---- tiny host finalize: fold BN (batch stats, biased variance) into scale/bias ----
    m = float(N * OH * OW)
    total = jnp.sum(psum[:, 0, :], axis=0)                               # (OCp,)
    total_sq = jnp.sum(psumsq[:, 0, :], axis=0)
    mean = total / m
    var = total_sq / m - mean * mean          # biased variance (PyTorch BN normalization)
    inv = jax.lax.rsqrt(var + eps)
    gamma_p = jnp.pad(gamma.astype(jnp.float32), (0, OCp - OC))
    beta_p = jnp.pad(beta.astype(jnp.float32), (0, OCp - OC))
    scale = (gamma_p * inv).reshape(1, OCp)
    bias = (beta_p - mean * gamma_p * inv).reshape(1, OCp)

    # ---- pass 2: y = conv*scale + bias, then activation ----
    negative_slope = 0.0 if act == "relu" else 0.2
    blk2_bytes = 2 * OH * OW * OCp * 4 + 2 * OCp * 4
    y = pl.pallas_call(
        functools.partial(bn_act_kernel, negative_slope=negative_slope),
        out_shape=jax.ShapeDtypeStruct((N, OH, OW, OCp), x_nchw.dtype),
        grid=(N,),
        in_specs=[
            pl.BlockSpec((1, OH, OW, OCp), lambda n: (n, 0, 0, 0)),
            pl.BlockSpec((1, OCp), lambda n: (0, 0)),
            pl.BlockSpec((1, OCp), lambda n: (0, 0)),
        ],
        out_specs=pl.BlockSpec((1, OH, OW, OCp), lambda n: (n, 0, 0, 0)),
        compiler_params=pltpu.CompilerParams(
            dimension_semantics=("parallel",),
            vmem_limit_bytes=_vmem_limit(blk2_bytes)),
    )(conv, scale, bias)

    # use_dropout: nn.Dropout(0.5) is identity in eval mode (see TODO above).
    del use_dropout

    # NOTE: when chaining Blocks (encoder stack), keep this NHWC slab and skip the
    # transpose below until the model boundary to avoid extra HBM passes.
    out = y[:, :, :, :OC]                               # drop channel padding
    return jnp.transpose(out, (0, 3, 1, 2))             # back to NCHW


def block_reference(x_nchw, weight, gamma, beta, *, act="relu", eps=1e-5):
    """Pure-JAX reference mirroring the kernel numerics (bf16 conv operands, f32 accumulation)."""
    xb = x_nchw.astype(jnp.bfloat16).astype(jnp.float32)
    wb = weight.astype(jnp.bfloat16).astype(jnp.float32)
    x = jnp.transpose(xb, (0, 2, 3, 1))
    xpad = jnp.pad(x, ((0, 0), (1, 1), (1, 1), (0, 0)), mode="reflect")
    w_hwio = jnp.transpose(wb, (2, 3, 1, 0))
    y = jax.lax.conv_general_dilated(
        xpad, w_hwio, window_strides=(2, 2), padding="VALID",
        dimension_numbers=("NHWC", "HWIO", "NHWC"),
        precision=jax.lax.Precision.HIGHEST)
    mean = jnp.mean(y, axis=(0, 1, 2), keepdims=True)
    var = jnp.mean((y - mean) ** 2, axis=(0, 1, 2), keepdims=True)
    y = (y - mean) * jax.lax.rsqrt(var + eps) * gamma + beta
    slope = 0.0 if act == "relu" else 0.2
    y = jnp.where(y > 0, y, slope * y)
    return jnp.transpose(y, (0, 3, 1, 2))


if __name__ == "__main__":
    key = jax.random.PRNGKey(0)
    k_x, k_w = jax.random.split(key)

    N, IC, H, W = 2, 4, 16, 16
    OC = 8

    x = jax.random.normal(k_x, (N, IC, H, W), dtype=jnp.float32)
    # Conv2d weight (out_channels, in_channels, 4, 4), bias=False.
    weight = jax.random.normal(k_w, (OC, IC, 4, 4), dtype=jnp.float32) * 0.05
    # BatchNorm2d default init: gamma=1, beta=0.
    gamma = jnp.ones((OC,), dtype=jnp.float32)
    beta = jnp.zeros((OC,), dtype=jnp.float32)

    out = block_forward(x, weight, gamma, beta, act="relu", use_dropout=False)
    out = jax.block_until_ready(out)

    ref = block_reference(x, weight, gamma, beta, act="relu")
    assert out.shape == (N, OC, H // 2, W // 2), out.shape
    max_err = float(jnp.max(jnp.abs(out - ref)))
    assert jnp.allclose(out, ref, atol=1e-3, rtol=1e-3), max_err

    print("KERNEL_OK")
</pallas_src>

<mosaic_0001>
module attributes {stable_mosaic.version = 11 : i64} {
  func.func @conv_stats_kernel(%arg0: i32, %arg1: memref<1x9x8x32xbf16, #tpu.memory_space<vmem>>, %arg2: memref<2x32x128xbf16, #tpu.memory_space<vmem>>, %arg3: memref<1x8x8x128xf32, #tpu.memory_space<vmem>>, %arg4: memref<1x1x128xf32, #tpu.memory_space<vmem>>, %arg5: memref<1x1x128xf32, #tpu.memory_space<vmem>>) attributes {dimension_semantics = [#tpu.dimension_semantics<parallel>], iteration_bounds = array<i64: 2>, scalar_prefetch = 0 : i64, scratch_operands = 0 : i64, tpu.core_type = #tpu.core_type<tc>, window_params = [{transform_indices = @transform_0, window_bounds = array<i64: 1, 9, 8, 32>}, {pipeline_mode = #tpu.pipeline_mode<synchronous>, transform_indices = @transform_1, window_bounds = array<i64: 2, 32, 128>}, {transform_indices = @transform_2, window_bounds = array<i64: 1, 8, 8, 128>}, {transform_indices = @transform_3, window_bounds = array<i64: 1, 1, 128>}, {transform_indices = @transform_4, window_bounds = array<i64: 1, 1, 128>}]} {
    %c0 = arith.constant 0 : index
    %c0_0 = arith.constant 0 : index
    %c0_1 = arith.constant 0 : index
    %0 = vector.load %arg2[%c0, %c0_0, %c0_1] : memref<2x32x128xbf16, #tpu.memory_space<vmem>>, vector<1x32x128xbf16>
    %1 = vector.shape_cast %0 : vector<1x32x128xbf16> to vector<32x128xbf16>
    %c1 = arith.constant 1 : index
    %c0_2 = arith.constant 0 : index
    %c0_3 = arith.constant 0 : index
    %2 = vector.load %arg2[%c1, %c0_2, %c0_3] : memref<2x32x128xbf16, #tpu.memory_space<vmem>>, vector<1x32x128xbf16>
    %3 = vector.shape_cast %2 : vector<1x32x128xbf16> to vector<32x128xbf16>
    %cst = arith.constant 0.000000e+00 : f32
    %4 = vector.broadcast %cst : f32 to vector<1x128xf32>
    %cst_4 = arith.constant 0.000000e+00 : f32
    %5 = vector.broadcast %cst_4 : f32 to vector<1x128xf32>
    %c0_5 = arith.constant 0 : index
    %c0_6 = arith.constant 0 : index
    %c0_7 = arith.constant 0 : index
    %c0_8 = arith.constant 0 : index
    %6 = vector.load %arg1[%c0_5, %c0_6, %c0_7, %c0_8] : memref<1x9x8x32xbf16, #tpu.memory_space<vmem>>, vector<1x1x8x32xbf16>
    %7 = vector.shape_cast %6 : vector<1x1x8x32xbf16> to vector<8x32xbf16>
    %c0_9 = arith.constant 0 : index
    %c1_10 = arith.constant 1 : index
    %c0_11 = arith.constant 0 : index
    %c0_12 = arith.constant 0 : index
    %8 = vector.load %arg1[%c0_9, %c1_10, %c0_11, %c0_12] : memref<1x9x8x32xbf16, #tpu.memory_space<vmem>>, vector<1x1x8x32xbf16>
    %9 = vector.shape_cast %8 : vector<1x1x8x32xbf16> to vector<8x32xbf16>
    %cst_13 = arith.constant dense<0.000000e+00> : vector<8x128xf32>
    %10 = tpu.matmul %7, %1, %cst_13 {dimension_numbers = #tpu.dot_dimension_numbers<[1], [0], [0], [1], [0, 0, 1, 1], [], []>} : vector<8x32xbf16>, vector<32x128xbf16>, vector<8x128xf32> -> vector<8x128xf32>
    %cst_14 = arith.constant dense<0.000000e+00> : vector<8x128xf32>
    %11 = tpu.matmul %9, %3, %cst_14 {dimension_numbers = #tpu.dot_dimension_numbers<[1], [0], [0], [1], [0, 0, 1, 1], [], []>} : vector<8x32xbf16>, vector<32x128xbf16>, vector<8x128xf32> -> vector<8x128xf32>
    %12 = arith.addf %10, %11 : vector<8x128xf32>
    %c0_15 = arith.constant 0 : index
    %c0_16 = arith.constant 0 : index
    %c0_17 = arith.constant 0 : index
    %c0_18 = arith.constant 0 : index
    %13 = vector.load %arg3[%c0_15, %c0_16, %c0_17, %c0_18] : memref<1x8x8x128xf32, #tpu.memory_space<vmem>>, vector<1x1x8x128xf32>
    %14 = vector.shape_cast %13 : vector<1x1x8x128xf32> to vector<8x128xf32>
    %15 = vector.shape_cast %12 : vector<8x128xf32> to vector<1x1x8x128xf32>
    tpu.vector_store %arg3[%c0_15, %c0_16, %c0_17, %c0_18], %15 {strides = array<i32>} : memref<1x8x8x128xf32, #tpu.memory_space<vmem>>, vector<1x1x8x128xf32>,
    %cst_19 = arith.constant dense<0.000000e+00> : vector<128xf32>
    %16 = vector.multi_reduction <add>, %12, %cst_19 [0] : vector<8x128xf32> to vector<128xf32>
    %17 = vector.shape_cast %16 : vector<128xf32> to vector<1x128xf32>
    %18 = arith.addf %4, %17 : vector<1x128xf32>
    %19 = arith.mulf %12, %12 : vector<8x128xf32>
    %cst_20 = arith.constant dense<0.000000e+00> : vector<128xf32>
    %20 = vector.multi_reduction <add>, %19, %cst_20 [0] : vector<8x128xf32> to vector<128xf32>
    %21 = vector.shape_cast %20 : vector<128xf32> to vector<1x128xf32>
    %22 = arith.addf %5, %21 : vector<1x128xf32>
    %c0_21 = arith.constant 0 : index
    %c1_22 = arith.constant 1 : index
    %c0_23 = arith.constant 0 : index
    %c0_24 = arith.constant 0 : index
    %23 = vector.load %arg1[%c0_21, %c1_22, %c0_23, %c0_24] : memref<1x9x8x32xbf16, #tpu.memory_space<vmem>>, vector<1x1x8x32xbf16>
    %24 = vector.shape_cast %23 : vector<1x1x8x32xbf16> to vector<8x32xbf16>
    %c0_25 = arith.constant 0 : index
    %c2 = arith.constant 2 : index
    %c0_26 = arith.constant 0 : index
    %c0_27 = arith.constant 0 : index
    %25 = vector.load %arg1[%c0_25, %c2, %c0_26, %c0_27] : memref<1x9x8x32xbf16, #tpu.memory_space<vmem>>, vector<1x1x8x32xbf16>
    %26 = vector.shape_cast %25 : vector<1x1x8x32xbf16> to vector<8x32xbf16>
    %cst_28 = arith.constant dense<0.000000e+00> : vector<8x128xf32>
    %27 = tpu.matmul %24, %1, %cst_28 {dimension_numbers = #tpu.dot_dimension_numbers<[1], [0], [0], [1], [0, 0, 1, 1], [], []>} : vector<8x32xbf16>, vector<32x128xbf16>, vector<8x128xf32> -> vector<8x128xf32>
    %cst_29 = arith.constant dense<0.000000e+00> : vector<8x128xf32>
    %28 = tpu.matmul %26, %3, %cst_29 {dimension_numbers = #tpu.dot_dimension_numbers<[1], [0], [0], [1], [0, 0, 1, 1], [], []>} : vector<8x32xbf16>, vector<32x128xbf16>, vector<8x128xf32> -> vector<8x128xf32>
    %29 = arith.addf %27, %28 : vector<8x128xf32>
    %c0_30 = arith.constant 0 : index
    %c1_31 = arith.constant 1 : index
    %c0_32 = arith.constant 0 : index
    %c0_33 = arith.constant 0 : index
    %30 = vector.load %arg3[%c0_30, %c1_31, %c0_32, %c0_33] : memref<1x8x8x128xf32, #tpu.memory_space<vmem>>, vector<1x1x8x128xf32>
    %31 = vector.shape_cast %30 : vector<1x1x8x128xf32> to vector<8x128xf32>
    %32 = vector.shape_cast %29 : vector<8x128xf32> to vector<1x1x8x128xf32>
    tpu.vector_store %arg3[%c0_30, %c1_31, %c0_32, %c0_33], %32 {strides = array<i32>} : memref<1x8x8x128xf32, #tpu.memory_space<vmem>>, vector<1x1x8x128xf32>,
    %cst_34 = arith.constant dense<0.000000e+00> : vector<128xf32>
    %33 = vector.multi_reduction <add>, %29, %cst_34 [0] : vector<8x128xf32> to vector<128xf32>
    %34 = vector.shape_cast %33 : vector<128xf32> to vector<1x128xf32>
    %35 = arith.addf %18, %34 : vector<1x128xf32>
    %36 = arith.mulf %29, %29 : vector<8x128xf32>
    %cst_35 = arith.constant dense<0.000000e+00> : vector<128xf32>
    %37 = vector.multi_reduction <add>, %36, %cst_35 [0] : vector<8x128xf32> to vector<128xf32>
    %38 = vector.shape_cast %37 : vector<128xf32> to vector<1x128xf32>
    %39 = arith.addf %22, %38 : vector<1x128xf32>
    %c0_36 = arith.constant 0 : index
    %c2_37 = arith.constant 2 : index
    %c0_38 = arith.constant 0 : index
    %c0_39 = arith.constant 0 : index
    %40 = vector.load %arg1[%c0_36, %c2_37, %c0_38, %c0_39] : memref<1x9x8x32xbf16, #tpu.memory_space<vmem>>, vector<1x1x8x32xbf16>
    %41 = vector.shape_cast %40 : vector<1x1x8x32xbf16> to vector<8x32xbf16>
    %c0_40 = arith.constant 0 : index
    %c3 = arith.constant 3 : index
    %c0_41 = arith.constant 0 : index
    %c0_42 = arith.constant 0 : index
    %42 = vector.load %arg1[%c0_40, %c3, %c0_41, %c0_42] : memref<1x9x8x32xbf16, #tpu.memory_space<vmem>>, vector<1x1x8x32xbf16>
    %43 = vector.shape_cast %42 : vector<1x1x8x32xbf16> to vector<8x32xbf16>
    %cst_43 = arith.constant dense<0.000000e+00> : vector<8x128xf32>
    %44 = tpu.matmul %41, %1, %cst_43 {dimension_numbers = #tpu.dot_dimension_numbers<[1], [0], [0], [1], [0, 0, 1, 1], [], []>} : vector<8x32xbf16>, vector<32x128xbf16>, vector<8x128xf32> -> vector<8x128xf32>
    %cst_44 = arith.constant dense<0.000000e+00> : vector<8x128xf32>
    %45 = tpu.matmul %43, %3, %cst_44 {dimension_numbers = #tpu.dot_dimension_numbers<[1], [0], [0], [1], [0, 0, 1, 1], [], []>} : vector<8x32xbf16>, vector<32x128xbf16>, vector<8x128xf32> -> vector<8x128xf32>
    %46 = arith.addf %44, %45 : vector<8x128xf32>
    %c0_45 = arith.constant 0 : index
    %c2_46 = arith.constant 2 : index
    %c0_47 = arith.constant 0 : index
    %c0_48 = arith.constant 0 : index
    %47 = vector.load %arg3[%c0_45, %c2_46, %c0_47, %c0_48] : memref<1x8x8x128xf32, #tpu.memory_space<vmem>>, vector<1x1x8x128xf32>
    %48 = vector.shape_cast %47 : vector<1x1x8x128xf32> to vector<8x128xf32>
    %49 = vector.shape_cast %46 : vector<8x128xf32> to vector<1x1x8x128xf32>
    tpu.vector_store %arg3[%c0_45, %c2_46, %c0_47, %c0_48], %49 {strides = array<i32>} : memref<1x8x8x128xf32, #tpu.memory_space<vmem>>, vector<1x1x8x128xf32>,
    %cst_49 = arith.constant dense<0.000000e+00> : vector<128xf32>
    %50 = vector.multi_reduction <add>, %46, %cst_49 [0] : vector<8x128xf32> to vector<128xf32>
    %51 = vector.shape_cast %50 : vector<128xf32> to vector<1x128xf32>
    %52 = arith.addf %35, %51 : vector<1x128xf32>
    %53 = arith.mulf %46, %46 : vector<8x128xf32>
    %cst_50 = arith.constant dense<0.000000e+00> : vector<128xf32>
    %54 = vector.multi_reduction <add>, %53, %cst_50 [0] : vector<8x128xf32> to vector<128xf32>
    %55 = vector.shape_cast %54 : vector<128xf32> to vector<1x128xf32>
    %56 = arith.addf %39, %55 : vector<1x128xf32>
    %c0_51 = arith.constant 0 : index
    %c3_52 = arith.constant 3 : index
    %c0_53 = arith.constant 0 : index
    %c0_54 = arith.constant 0 : index
    %57 = vector.load %arg1[%c0_51, %c3_52, %c0_53, %c0_54] : memref<1x9x8x32xbf16, #tpu.memory_space<vmem>>, vector<1x1x8x32xbf16>
    %58 = vector.shape_cast %57 : vector<1x1x8x32xbf16> to vector<8x32xbf16>
    %c0_55 = arith.constant 0 : index
    %c4 = arith.constant 4 : index
    %c0_56 = arith.constant 0 : index
    %c0_57 = arith.constant 0 : index
    %59 = vector.load %arg1[%c0_55, %c4, %c0_56, %c0_57] : memref<1x9x8x32xbf16, #tpu.memory_space<vmem>>, vector<1x1x8x32xbf16>
    %60 = vector.shape_cast %59 : vector<1x1x8x32xbf16> to vector<8x32xbf16>
    %cst_58 = arith.constant dense<0.000000e+00> : vector<8x128xf32>
    %61 = tpu.matmul %58, %1, %cst_58 {dimension_numbers = #tpu.dot_dimension_numbers<[1], [0], [0], [1], [0, 0, 1, 1], [], []>} : vector<8x32xbf16>, vector<32x128xbf16>, vector<8x128xf32> -> vector<8x128xf32>
    %cst_59 = arith.constant dense<0.000000e+00> : vector<8x128xf32>
    %62 = tpu.matmul %60, %3, %cst_59 {dimension_numbers = #tpu.dot_dimension_numbers<[1], [0], [0], [1], [0, 0, 1, 1], [], []>} : vector<8x32xbf16>, vector<32x128xbf16>, vector<8x128xf32> -> vector<8x128xf32>
    %63 = arith.addf %61, %62 : vector<8x128xf32>
    %c0_60 = arith.constant 0 : index
    %c3_61 = arith.constant 3 : index
    %c0_62 = arith.constant 0 : index
    %c0_63 = arith.constant 0 : index
    %64 = vector.load %arg3[%c0_60, %c3_61, %c0_62, %c0_63] : memref<1x8x8x128xf32, #tpu.memory_space<vmem>>, vector<1x1x8x128xf32>
    %65 = vector.shape_cast %64 : vector<1x1x8x128xf32> to vector<8x128xf32>
    %66 = vector.shape_cast %63 : vector<8x128xf32> to vector<1x1x8x128xf32>
    tpu.vector_store %arg3[%c0_60, %c3_61, %c0_62, %c0_63], %66 {strides = array<i32>} : memref<1x8x8x128xf32, #tpu.memory_space<vmem>>, vector<1x1x8x128xf32>,
    %cst_64 = arith.constant dense<0.000000e+00> : vector<128xf32>
    %67 = vector.multi_reduction <add>, %63, %cst_64 [0] : vector<8x128xf32> to vector<128xf32>
    %68 = vector.shape_cast %67 : vector<128xf32> to vector<1x128xf32>
    %69 = arith.addf %52, %68 : vector<1x128xf32>
    %70 = arith.mulf %63, %63 : vector<8x128xf32>
    %cst_65 = arith.constant dense<0.000000e+00> : vector<128xf32>
    %71 = vector.multi_reduction <add>, %70, %cst_65 [0] : vector<8x128xf32> to vector<128xf32>
    %72 = vector.shape_cast %71 : vector<128xf32> to vector<1x128xf32>
    %73 = arith.addf %56, %72 : vector<1x128xf32>
    %c0_66 = arith.constant 0 : index
    %c4_67 = arith.constant 4 : index
    %c0_68 = arith.constant 0 : index
    %c0_69 = arith.constant 0 : index
    %74 = vector.load %arg1[%c0_66, %c4_67, %c0_68, %c0_69] : memref<1x9x8x32xbf16, #tpu.memory_space<vmem>>, vector<1x1x8x32xbf16>
    %75 = vector.shape_cast %74 : vector<1x1x8x32xbf16> to vector<8x32xbf16>
    %c0_70 = arith.constant 0 : index
    %c5 = arith.constant 5 : index
    %c0_71 = arith.constant 0 : index
    %c0_72 = arith.constant 0 : index
    %76 = vector.load %arg1[%c0_70, %c5, %c0_71, %c0_72] : memref<1x9x8x32xbf16, #tpu.memory_space<vmem>>, vector<1x1x8x32xbf16>
    %77 = vector.shape_cast %76 : vector<1x1x8x32xbf16> to vector<8x32xbf16>
    %cst_73 = arith.constant dense<0.000000e+00> : vector<8x128xf32>
    %78 = tpu.matmul %75, %1, %cst_73 {dimension_numbers = #tpu.dot_dimension_numbers<[1], [0], [0], [1], [0, 0, 1, 1], [], []>} : vector<8x32xbf16>, vector<32x128xbf16>, vector<8x128xf32> -> vector<8x128xf32>
    %cst_74 = arith.constant dense<0.000000e+00> : vector<8x128xf32>
    %79 = tpu.matmul %77, %3, %cst_74 {dimension_numbers = #tpu.dot_dimension_numbers<[1], [0], [0], [1], [0, 0, 1, 1], [], []>} : vector<8x32xbf16>, vector<32x128xbf16>, vector<8x128xf32> -> vector<8x128xf32>
    %80 = arith.addf %78, %79 : vector<8x128xf32>
    %c0_75 = arith.constant 0 : index
    %c4_76 = arith.constant 4 : index
    %c0_77 = arith.constant 0 : index
    %c0_78 = arith.constant 0 : index
    %81 = vector.load %arg3[%c0_75, %c4_76, %c0_77, %c0_78] : memref<1x8x8x128xf32, #tpu.memory_space<vmem>>, vector<1x1x8x128xf32>
    %82 = vector.shape_cast %81 : vector<1x1x8x128xf32> to vector<8x128xf32>
    %83 = vector.shape_cast %80 : vector<8x128xf32> to vector<1x1x8x128xf32>
    tpu.vector_store %arg3[%c0_75, %c4_76, %c0_77, %c0_78], %83 {strides = array<i32>} : memref<1x8x8x128xf32, #tpu.memory_space<vmem>>, vector<1x1x8x128xf32>,
    %cst_79 = arith.constant dense<0.000000e+00> : vector<128xf32>
    %84 = vector.multi_reduction <add>, %80, %cst_79 [0] : vector<8x128xf32> to vector<128xf32>
    %85 = vector.shape_cast %84 : vector<128xf32> to vector<1x128xf32>
    %86 = arith.addf %69, %85 : vector<1x128xf32>
    %87 = arith.mulf %80, %80 : vector<8x128xf32>
    %cst_80 = arith.constant dense<0.000000e+00> : vector<128xf32>
    %88 = vector.multi_reduction <add>, %87, %cst_80 [0] : vector<8x128xf32> to vector<128xf32>
    %89 = vector.shape_cast %88 : vector<128xf32> to vector<1x128xf32>
    %90 = arith.addf %73, %89 : vector<1x128xf32>
    %c0_81 = arith.constant 0 : index
    %c5_82 = arith.constant 5 : index
    %c0_83 = arith.constant 0 : index
    %c0_84 = arith.constant 0 : index
    %91 = vector.load %arg1[%c0_81, %c5_82, %c0_83, %c0_84] : memref<1x9x8x32xbf16, #tpu.memory_space<vmem>>, vector<1x1x8x32xbf16>
    %92 = vector.shape_cast %91 : vector<1x1x8x32xbf16> to vector<8x32xbf16>
    %c0_85 = arith.constant 0 : index
    %c6 = arith.constant 6 : index
    %c0_86 = arith.constant 0 : index
    %c0_87 = arith.constant 0 : index
    %93 = vector.load %arg1[%c0_85, %c6, %c0_86, %c0_87] : memref<1x9x8x32xbf16, #tpu.memory_space<vmem>>, vector<1x1x8x32xbf16>
    %94 = vector.shape_cast %93 : vector<1x1x8x32xbf16> to vector<8x32xbf16>
    %cst_88 = arith.constant dense<0.000000e+00> : vector<8x128xf32>
    %95 = tpu.matmul %92, %1, %cst_88 {dimension_numbers = #tpu.dot_dimension_numbers<[1], [0], [0], [1], [0, 0, 1, 1], [], []>} : vector<8x32xbf16>, vector<32x128xbf16>, vector<8x128xf32> -> vector<8x128xf32>
    %cst_89 = arith.constant dense<0.000000e+00> : vector<8x128xf32>
    %96 = tpu.matmul %94, %3, %cst_89 {dimension_numbers = #tpu.dot_dimension_numbers<[1], [0], [0], [1], [0, 0, 1, 1], [], []>} : vector<8x32xbf16>, vector<32x128xbf16>, vector<8x128xf32> -> vector<8x128xf32>
    %97 = arith.addf %95, %96 : vector<8x128xf32>
    %c0_90 = arith.constant 0 : index
    %c5_91 = arith.constant 5 : index
    %c0_92 = arith.constant 0 : index
    %c0_93 = arith.constant 0 : index
    %98 = vector.load %arg3[%c0_90, %c5_91, %c0_92, %c0_93] : memref<1x8x8x128xf32, #tpu.memory_space<vmem>>, vector<1x1x8x128xf32>
    %99 = vector.shape_cast %98 : vector<1x1x8x128xf32> to vector<8x128xf32>
    %100 = vector.shape_cast %97 : vector<8x128xf32> to vector<1x1x8x128xf32>
    tpu.vector_store %arg3[%c0_90, %c5_91, %c0_92, %c0_93], %100 {strides = array<i32>} : memref<1x8x8x128xf32, #tpu.memory_space<vmem>>, vector<1x1x8x128xf32>,
    %cst_94 = arith.constant dense<0.000000e+00> : vector<128xf32>
    %101 = vector.multi_reduction <add>, %97, %cst_94 [0] : vector<8x128xf32> to vector<128xf32>
    %102 = vector.shape_cast %101 : vector<128xf32> to vector<1x128xf32>
    %103 = arith.addf %86, %102 : vector<1x128xf32>
    %104 = arith.mulf %97, %97 : vector<8x128xf32>
    %cst_95 = arith.constant dense<0.000000e+00> : vector<128xf32>
    %105 = vector.multi_reduction <add>, %104, %cst_95 [0] : vector<8x128xf32> to vector<128xf32>
    %106 = vector.shape_cast %105 : vector<128xf32> to vector<1x128xf32>
    %107 = arith.addf %90, %106 : vector<1x128xf32>
    %c0_96 = arith.constant 0 : index
    %c6_97 = arith.constant 6 : index
    %c0_98 = arith.constant 0 : index
    %c0_99 = arith.constant 0 : index
    %108 = vector.load %arg1[%c0_96, %c6_97, %c0_98, %c0_99] : memref<1x9x8x32xbf16, #tpu.memory_space<vmem>>, vector<1x1x8x32xbf16>
    %109 = vector.shape_cast %108 : vector<1x1x8x32xbf16> to vector<8x32xbf16>
    %c0_100 = arith.constant 0 : index
    %c7 = arith.constant 7 : index
    %c0_101 = arith.constant 0 : index
    %c0_102 = arith.constant 0 : index
    %110 = vector.load %arg1[%c0_100, %c7, %c0_101, %c0_102] : memref<1x9x8x32xbf16, #tpu.memory_space<vmem>>, vector<1x1x8x32xbf16>
    %111 = vector.shape_cast %110 : vector<1x1x8x32xbf16> to vector<8x32xbf16>
    %cst_103 = arith.constant dense<0.000000e+00> : vector<8x128xf32>
    %112 = tpu.matmul %109, %1, %cst_103 {dimension_numbers = #tpu.dot_dimension_numbers<[1], [0], [0], [1], [0, 0, 1, 1], [], []>} : vector<8x32xbf16>, vector<32x128xbf16>, vector<8x128xf32> -> vector<8x128xf32>
    %cst_104 = arith.constant dense<0.000000e+00> : vector<8x128xf32>
    %113 = tpu.matmul %111, %3, %cst_104 {dimension_numbers = #tpu.dot_dimension_numbers<[1], [0], [0], [1], [0, 0, 1, 1], [], []>} : vector<8x32xbf16>, vector<32x128xbf16>, vector<8x128xf32> -> vector<8x128xf32>
    %114 = arith.addf %112, %113 : vector<8x128xf32>
    %c0_105 = arith.constant 0 : index
    %c6_106 = arith.constant 6 : index
    %c0_107 = arith.constant 0 : index
    %c0_108 = arith.constant 0 : index
    %115 = vector.load %arg3[%c0_105, %c6_106, %c0_107, %c0_108] : memref<1x8x8x128xf32, #tpu.memory_space<vmem>>, vector<1x1x8x128xf32>
    %116 = vector.shape_cast %115 : vector<1x1x8x128xf32> to vector<8x128xf32>
    %117 = vector.shape_cast %114 : vector<8x128xf32> to vector<1x1x8x128xf32>
    tpu.vector_store %arg3[%c0_105, %c6_106, %c0_107, %c0_108], %117 {strides = array<i32>} : memref<1x8x8x128xf32, #tpu.memory_space<vmem>>, vector<1x1x8x128xf32>,
    %cst_109 = arith.constant dense<0.000000e+00> : vector<128xf32>
    %118 = vector.multi_reduction <add>, %114, %cst_109 [0] : vector<8x128xf32> to vector<128xf32>
    %119 = vector.shape_cast %118 : vector<128xf32> to vector<1x128xf32>
    %120 = arith.addf %103, %119 : vector<1x128xf32>
    %121 = arith.mulf %114, %114 : vector<8x128xf32>
    %cst_110 = arith.constant dense<0.000000e+00> : vector<128xf32>
    %122 = vector.multi_reduction <add>, %121, %cst_110 [0] : vector<8x128xf32> to vector<128xf32>
    %123 = vector.shape_cast %122 : vector<128xf32> to vector<1x128xf32>
    %124 = arith.addf %107, %123 : vector<1x128xf32>
    %c0_111 = arith.constant 0 : index
    %c7_112 = arith.constant 7 : index
    %c0_113 = arith.constant 0 : index
    %c0_114 = arith.constant 0 : index
    %125 = vector.load %arg1[%c0_111, %c7_112, %c0_113, %c0_114] : memref<1x9x8x32xbf16, #tpu.memory_space<vmem>>, vector<1x1x8x32xbf16>
    %126 = vector.shape_cast %125 : vector<1x1x8x32xbf16> to vector<8x32xbf16>
    %c0_115 = arith.constant 0 : index
    %c8 = arith.constant 8 : index
    %c0_116 = arith.constant 0 : index
    %c0_117 = arith.constant 0 : index
    %127 = vector.load %arg1[%c0_115, %c8, %c0_116, %c0_117] : memref<1x9x8x32xbf16, #tpu.memory_space<vmem>>, vector<1x1x8x32xbf16>
    %128 = vector.shape_cast %127 : vector<1x1x8x32xbf16> to vector<8x32xbf16>
    %cst_118 = arith.constant dense<0.000000e+00> : vector<8x128xf32>
    %129 = tpu.matmul %126, %1, %cst_118 {dimension_numbers = #tpu.dot_dimension_numbers<[1], [0], [0], [1], [0, 0, 1, 1], [], []>} : vector<8x32xbf16>, vector<32x128xbf16>, vector<8x128xf32> -> vector<8x128xf32>
    %cst_119 = arith.constant dense<0.000000e+00> : vector<8x128xf32>
    %130 = tpu.matmul %128, %3, %cst_119 {dimension_numbers = #tpu.dot_dimension_numbers<[1], [0], [0], [1], [0, 0, 1, 1], [], []>} : vector<8x32xbf16>, vector<32x128xbf16>, vector<8x128xf32> -> vector<8x128xf32>
    %131 = arith.addf %129, %130 : vector<8x128xf32>
    %c0_120 = arith.constant 0 : index
    %c7_121 = arith.constant 7 : index
    %c0_122 = arith.constant 0 : index
    %c0_123 = arith.constant 0 : index
    %132 = vector.load %arg3[%c0_120, %c7_121, %c0_122, %c0_123] : memref<1x8x8x128xf32, #tpu.memory_space<vmem>>, vector<1x1x8x128xf32>
    %133 = vector.shape_cast %132 : vector<1x1x8x128xf32> to vector<8x128xf32>
    %134 = vector.shape_cast %131 : vector<8x128xf32> to vector<1x1x8x128xf32>
    tpu.vector_store %arg3[%c0_120, %c7_121, %c0_122, %c0_123], %134 {strides = array<i32>} : memref<1x8x8x128xf32, #tpu.memory_space<vmem>>, vector<1x1x8x128xf32>,
    %cst_124 = arith.constant dense<0.000000e+00> : vector<128xf32>
    %135 = vector.multi_reduction <add>, %131, %cst_124 [0] : vector<8x128xf32> to vector<128xf32>
    %136 = vector.shape_cast %135 : vector<128xf32> to vector<1x128xf32>
    %137 = arith.addf %120, %136 : vector<1x128xf32>
    %138 = arith.mulf %131, %131 : vector<8x128xf32>
    %cst_125 = arith.constant dense<0.000000e+00> : vector<128xf32>
    %139 = vector.multi_reduction <add>, %138, %cst_125 [0] : vector<8x128xf32> to vector<128xf32>
    %140 = vector.shape_cast %139 : vector<128xf32> to vector<1x128xf32>
    %141 = arith.addf %124, %140 : vector<1x128xf32>
    %c0_126 = arith.constant 0 : index
    %c0_127 = arith.constant 0 : index
    %c0_128 = arith.constant 0 : index
    %142 = vector.load %arg4[%c0_126, %c0_127, %c0_128] : memref<1x1x128xf32, #tpu.memory_space<vmem>>, vector<1x1x128xf32>
    %143 = vector.shape_cast %142 : vector<1x1x128xf32> to vector<1x128xf32>
    %144 = vector.shape_cast %137 : vector<1x128xf32> to vector<1x1x128xf32>
    tpu.vector_store %arg4[%c0_126, %c0_127, %c0_128], %144 {strides = array<i32>} : memref<1x1x128xf32, #tpu.memory_space<vmem>>, vector<1x1x128xf32>,
    %c0_129 = arith.constant 0 : index
    %c0_130 = arith.constant 0 : index
    %c0_131 = arith.constant 0 : index
    %145 = vector.load %arg5[%c0_129, %c0_130, %c0_131] : memref<1x1x128xf32, #tpu.memory_space<vmem>>, vector<1x1x128xf32>
    %146 = vector.shape_cast %145 : vector<1x1x128xf32> to vector<1x128xf32>
    %147 = vector.shape_cast %141 : vector<1x128xf32> to vector<1x1x128xf32>
    tpu.vector_store %arg5[%c0_129, %c0_130, %c0_131], %147 {strides = array<i32>} : memref<1x1x128xf32, #tpu.memory_space<vmem>>, vector<1x1x128xf32>,
    return
  }
  func.func @transform_0(%arg0: i32) -> (i32, i32, i32, i32) {
    %c0_i32 = arith.constant 0 : i32
    %c0_i32_0 = arith.constant 0 : i32
    %c0_i32_1 = arith.constant 0 : i32
    %c0_i32_2 = arith.constant 0 : i32
    return %arg0, %c0_i32, %c0_i32_0, %c0_i32_1 : i32, i32, i32, i32
  }
  func.func @transform_1(%arg0: i32) -> (i32, i32, i32) {
    %c0_i32 = arith.constant 0 : i32
    %c0_i32_0 = arith.constant 0 : i32
    %c0_i32_1 = arith.constant 0 : i32
    %c0_i32_2 = arith.constant 0 : i32
    return %c0_i32, %c0_i32_0, %c0_i32_1 : i32, i32, i32
  }
  func.func @transform_2(%arg0: i32) -> (i32, i32, i32, i32) {
    %c0_i32 = arith.constant 0 : i32
    %c0_i32_0 = arith.constant 0 : i32
    %c0_i32_1 = arith.constant 0 : i32
    %c0_i32_2 = arith.constant 0 : i32
    return %arg0, %c0_i32, %c0_i32_0, %c0_i32_1 : i32, i32, i32, i32
  }
  func.func @transform_3(%arg0: i32) -> (i32, i32, i32) {
    %c0_i32 = arith.constant 0 : i32
    %c0_i32_0 = arith.constant 0 : i32
    %c0_i32_1 = arith.constant 0 : i32
    return %arg0, %c0_i32, %c0_i32_0 : i32, i32, i32
  }
  func.func @transform_4(%arg0: i32) -> (i32, i32, i32) {
    %c0_i32 = arith.constant 0 : i32
    %c0_i32_0 = arith.constant 0 : i32
    %c0_i32_1 = arith.constant 0 : i32
    return %arg0, %c0_i32, %c0_i32_0 : i32, i32, i32
  }
}

</mosaic_0001>

<bundles_post_ra>
// kernel: tpu_custom_call.1
= control target key start
LH: loop header
LB: loop body
LE: loop exit
PB: predicated region body
PF: predicated region fallthrough
CT: control target
= control target key end

     0   :  { %10 = vsyncpa [#allocation3], 0  ;;  %s1510_s0 = inlined_call_operand.hbm [shape: bf16[2,9,8,32], index: 0, kind: input, shape index: {}]   ;;  %s1511_s1 = inlined_call_operand.hbm [shape: bf16[2,32,128], index: 1, kind: input, shape index: {}]   ;;  %s1512_s2 = inlined_call_operand.hbm [shape: f32[2,8,8,128], index: 2, kind: output, shape index: {0}]   ;;  %s1513_s3 = inlined_call_operand.hbm [shape: f32[2,1,128], index: 3, kind: output, shape index: {1}]   ;;  %s1514_s4 = inlined_call_operand.hbm [shape: f32[2,1,128], index: 4, kind: output, shape index: {2}]  }
   0x1   :  { %12 = vsyncpa [#allocation3 + $0x1], 0 }
   0x2   :  { %13 = vsyncpa [#allocation6], 0 }
   0x3   :  { %14 = vsyncpa [#allocation4], 0 }
   0x4   :  { %16 = vsyncpa [#allocation4 + $0x1], 0 }
   0x5   :  { %17 = vsyncpa [#allocation9], 0 }
   0x6   :  { %19 = vsyncpa [#allocation9 + $0x1], 0  ;;  %s1257_s15 = smov 0   ;;  %s1259_s16 = smov 0  }
   0x7   :  { %s1261_s17 = smov 0   ;;  %s1263_s18 = smov 0  }
   0x8 LB: > { %s1278_s19 = sadd.s32 4294967295, %s1225_s18   ;;  %s1515_s20 = sadd.s32 4294967294, %s1225_s18   ;;  %s1225_s18 = sphi %s1263_s18, %s1530_s18   ;;  %s1221_s17 = sphi %s1261_s17, %s1529_s17   ;;  %s1217_s16 = sphi %s1259_s16, %s1528_s16   ;;  %s1213_s15 = sphi %s1257_s15, %s1527_s15  }
   0x9   : > { %p45_p0 = scmp.ne.s32.totalorder %s1217_s16, %s1213_s15  ;;  %p46_p1 = scmp.eq.s32.totalorder %s1278_s19, 0 }
   0xa   : > { %p90_p2 = scmp.eq.s32.totalorder %s1278_s19, 1  ;;  %p96_p3 = scmp.eq.s32.totalorder %s1515_s20, 1 }
   0xb   : > { %p1289_p4 = por %p46_p1, %p45_p0  ;;  %p890_p5 = scmp.ge.s32.totalorder %s1225_s18, 1 }
   0xc   : > { %p1294_p6 = por %p96_p3, %p45_p0  ;;  %p155_p7 = scmp.lt.s32.totalorder %s1225_s18, 3 }
   0xd   : > { %s166_s25 = sshll.u32 %s1511_s1, 4  ;;  %s1227_s27 = smov [#allocation5]   ;;  %s167_s25 = int_to_ptr.hbm [resolvable:$true] %s166_s25 }
   0xe   : > { %p1302_p8 = pnand %p890_p5, %p155_p7  ;;  %s168_s28 = sshll.u32 %s1227_s27, 4  ;;  %s169_s28 = int_to_ptr.vmem [resolvable:$true] %s168_s28 }
   0xf   : > { %s1312_s29 = sadd.s32 1, %s1225_s18   ;;  %s1516_s30 = smov 64  }
  0x10   : > { %p976_p9 = pneg %p1302_p8  ;;  %s1517_s5 = smov 4  }
  0x11   : > { %s29_s6 = ssub.s32 %s1225_s18, %s1312_s29  ;;  %s32_s7 = sadd.s32 1, %s1221_s17 }
  0x12   : > { %p977_p10 = pnand %p976_p9, %p46_p1  ;;  %p30_p12 = scmp.eq.s32.totalorder %s29_s6, 0 }
  0x13   : > { %p39_p13 = scmp.ne.s32.totalorder %s1221_s17, %s1217_s16  ;;  %p40_p0 = scmp.eq.s32.totalorder %s1225_s18, 0 }
  0x14   : > { %979 = dma.hbm_to_vmem [thread:$0]  (!%p977_p10), %s167_s25, 512, %s169_s28, [#allocation6], %s1516_s30, %s1516_s30, %s1517_s5  }
  0x15   : > { %p995_p3 = scmp.lt.s32.totalorder %s1225_s18, 2  ;;  %p41_p5 = por %p40_p0, %p39_p13 }
  0x16   : > { %s1325_s8 = scalar_select %p30_p12, %s1221_s17, %s32_s7  }
  0x17   : > { %p1329_p7 = por %p90_p2, %p39_p13  ;;  %s182_s10 = sand.u32 1, %s1221_s17  }
  0x18   : > { %s962_s11 = smul.u32 36, %s1225_s18  ;;  %p1338_p9 = pnand %p995_p3, %p41_p5 }
  0x19   : > { %s961_s12 = smul.u32 36, %s182_s10  ;;  %s183_s6 = scalar_lea.sflag [#allocation3], %s182_s10 }
  0x1a   : > { %s191_s23 = scalar_lea.hbm %s1510_s0, %s962_s11  ;;  %p1069_p10 = pneg %p1338_p9 }
  0x1b   : > { %s192_s25 = sshll.u32 %s191_s23, 4  ;;  %s186_s27 = scalar_lea.vmem [#allocation2], %s961_s12  ;;  %s193_s25 = int_to_ptr.hbm [resolvable:$true] %s192_s25 }
  0x1c   : > { %s194_s28 = sshll.u32 %s186_s27, 4  ;;  %s1065_s7 = sshra.s32 %s193_s25, 4  ;;  %s195_s28 = int_to_ptr.vmem [resolvable:$true] %s194_s28  ;;  %s1066_s7 = int_to_ptr.hbm [resolvable:$true] %s1065_s7 }
  0x1d   : > { %s1067_s20 = scalar_lea.hbm %s1066_s7, 36  ;;  %s1072_s14 = scalar_lea.hbm %s1510_s0, 72 }
  0x1e   : > { %p1068_p2 = scmp.ne.s32.totalorder %s1066_s7, %s1067_s20  ;;  %p1073_p0 = scmp.lt.s32.totalorder %s1066_s7, %s1510_s0 }
  0x1f   : > { %p1074_p3 = scmp.lt.s32.totalorder %s1072_s14, %s1067_s20 }
  0x20   : > { %p1070_p12 = pnand %p1069_p10, %p1068_p2 }
  0x21   : > { %p1075_p5 = por %p1074_p3, %p1073_p0 }
  0x22   : > { %p1071_p13 = pneg %p1070_p12 }
  0x24   : > { %p1076_p11 = pnand %p1075_p5, %p1071_p13 }
  0x26   : > { %1079 = shalt.err (!%p1076_p11)
}
  0x27   : > { %s1523_s10 = smov 4   ;;  %s1524_s12 = smov 64  }
  0x28   : > { %983 = dma.hbm_to_vmem [thread:$0]  (!%p1338_p9), %s193_s25, 576, %s195_s28, %s183_s6, %s1524_s12, %s1524_s12, %s1523_s10  }
  0x29   : > { %206 = sbr.rel (%p1302_p8) target bundleno = 274 (0x112), region = 28  ;;  %s1358_s23 = sand.u32 (!%p1302_p8), 1, %s1217_s16  }
  0x2a   : > { %s963_s30 = smul.u32 (!%p1302_p8), 36, %s1358_s23  ;;  %s209_s20 = scalar_lea.sflag (!%p1302_p8), [#allocation3], %s1358_s23 }
  0x2c   : > { %s1362_s5 = scalar_lea.vmem (!%p1302_p8), [#allocation2], %s963_s30 }
  0x2e   : > { %1196 = dma.done.wait (%p1289_p4), %s209_s20, 576  }
  0x2f   : > { %1198 = vsyncadd (%p1289_p4), %s209_s20, 4294966720 }
  0x30   : > { %1200 = dma.done.wait (%p46_p1), [#allocation6], 512  }
  0x31   : > { %1202 = vsyncadd (%p46_p1), [#allocation6], 4294966784  ;;  %v959_v0 = vld [vmem:[#allocation5 + $0x18] sm:$0xff]  ;;  %v957_v1 = vld [vmem:[#allocation5 + $0x8] sm:$0xff]  ;;  %vm276_vm0 = vcmask 261120   ;;  %s896_s21 = sshll.u32 %s1358_s23, 6 }
  0x32   : > { %286 = vmatpush.bf16.msra.mxu0 %v959_v0  ;;  %314 = vmatpush.bf16.msra.mxu1 %v957_v1  ;;  %v958_v2 = vld [vmem:[#allocation5 + $0x10] sm:$0xff]  ;;  %v956_v3 = vld [vmem:[#allocation5] sm:$0xff]  ;;  %v261_v5 = vld [vmem:[%s1362_s5] sm:$0xf]  ;;  %s1405_s26 = scalar_lea.vmem [#allocation7], %s896_s21  ;;  %s960_s24 = sshll.u32 %s1278_s19, 6 }
  0x33   : > { %349 = vmatpush.bf16.msra.mxu2 %v959_v0  ;;  %365 = vmatpush.bf16.msra.mxu3 %v957_v1  ;;  %v897_v4 = vld [vmem:[%s1362_s5 + $0x4] sm:$0xf]  ;;  %v917_v6 = vld [vmem:[%s1362_s5 + $0x8] sm:$0xf]  ;;  %v922_v8 = vld [vmem:[%s1362_s5 + $0xc] sm:$0xf]  ;;  %s1417_s28 = scalar_lea.hbm %s1512_s2, %s960_s24 }
  0x34   : > { %v916_v7 = vld [vmem:[%s1362_s5 + $0x4] sm:$0xf]  ;;  %v921_v9 = vld [vmem:[%s1362_s5 + $0x8] sm:$0xf]  ;;  %v927_v10 = vld [vmem:[%s1362_s5 + $0x10] sm:$0xf] }
  0x35   : > { %v926_v11 = vld [vmem:[%s1362_s5 + $0xc] sm:$0xf]  ;;  %v932_v12 = vld [vmem:[%s1362_s5 + $0x14] sm:$0xf]  ;;  %v931_v13 = vld [vmem:[%s1362_s5 + $0x10] sm:$0xf] }
  0x36   : > { %287 = vmatpush.bf16.msra.mxu0 %v958_v2  ;;  %315 = vmatpush.bf16.msra.mxu1 %v956_v3  ;;  %v937_v14 = vld [vmem:[%s1362_s5 + $0x18] sm:$0xf]  ;;  %v936_v15 = vld [vmem:[%s1362_s5 + $0x14] sm:$0xf]  ;;  %v942_v16 = vld [vmem:[%s1362_s5 + $0x1c] sm:$0xf] }
  0x37   : > { %350 = vmatpush.bf16.msra.mxu2 %v958_v2  ;;  %366 = vmatpush.bf16.msra.mxu3 %v956_v3  ;;  %v941_v17 = vld [vmem:[%s1362_s5 + $0x18] sm:$0xf]  ;;  %v947_v18 = vld [vmem:[%s1362_s5 + $0x20] sm:$0xf]  ;;  %v946_v19 = vld [vmem:[%s1362_s5 + $0x1c] sm:$0xf] }
  0x38   : > { %s724_s6 = sshll.u32 %s1405_s26, 4  ;;  %s726_s7 = sshll.u32 %s1417_s28, 4  ;;  %s1422_s6 = int_to_ptr.vmem [resolvable:$true] %s724_s6  ;;  %s1424_s7 = int_to_ptr.hbm [resolvable:$true] %s726_s7 }
  0x39   : > { %906 = vmatmul.msk.bf16.vlgmr.msra.gmra.mxu0 %vm276_vm0, %v897_v4  ;;  %915 = vmatmul.msk.bf16.vlgmr.msra.gmra.mxu1 %vm276_vm0, %v261_v5  ;;  %s704_s11 = scalar_lea.sflag [#allocation4], %s1358_s23  ;;  %s1109_s13 = sshra.s32 %s1424_s7, 4  ;;  %s1110_s13 = int_to_ptr.hbm [resolvable:$true] %s1109_s13 }
  0x3a   : > { %918 = vmatmul.msk.bf16.vlgmr.msra.gmra.mxu2 %vm276_vm0, %v917_v6  ;;  %919 = vmatmul.msk.bf16.vlgmr.msra.gmra.mxu3 %vm276_vm0, %v916_v7  ;;  %s1111_s14 = scalar_lea.hbm %s1110_s13, 64  ;;  %s1115_s30 = scalar_lea.hbm %s1512_s2, 128 }
  0x3b   : > { %453 = vmatpush.bf16.msrb.mxu2 %v959_v0  ;;  %469 = vmatpush.bf16.msrb.mxu3 %v957_v1  ;;  %p1112_p1 = scmp.ne.s32.totalorder %s1110_s13, %s1111_s14  ;;  %p1116_p11 = scmp.lt.s32.totalorder %s1110_s13, %s1512_s2 }
  0x3c   : > { %401 = vmatpush.bf16.msrb.mxu0 %v959_v0  ;;  %417 = vmatpush.bf16.msrb.mxu1 %v957_v1  ;;  %p1117_p9 = scmp.lt.s32.totalorder %s1115_s30, %s1111_s14 }
  0x3d   : > { %p1113_p4 = pnand %p1112_p1, %p1329_p7 }
  0x3e   : > { %p1118_p2 = por %p1117_p9, %p1116_p11 }
  0x3f   : > { %454 = vmatpush.bf16.msrb.mxu2 %v958_v2  ;;  %470 = vmatpush.bf16.msrb.mxu3 %v956_v3  ;;  %p1114_p8 = pneg %p1113_p4 }
  0x40   : > { %402 = vmatpush.bf16.msrb.mxu0 %v958_v2  ;;  %418 = vmatpush.bf16.msrb.mxu1 %v956_v3 }
  0x41   : > { %p1119_p10 = pnand %p1118_p2, %p1114_p8 }
  0x43   : > { %557 = vmatpush.bf16.msra.mxu2 %v959_v0  ;;  %573 = vmatpush.bf16.msra.mxu3 %v957_v1 }
  0x44   : > { %505 = vmatpush.bf16.msra.mxu0 %v959_v0  ;;  %521 = vmatpush.bf16.msra.mxu1 %v957_v1 }
  0x47   : > { %558 = vmatpush.bf16.msra.mxu2 %v958_v2  ;;  %574 = vmatpush.bf16.msra.mxu3 %v956_v3 }
  0x48   : > { %506 = vmatpush.bf16.msra.mxu0 %v958_v2  ;;  %522 = vmatpush.bf16.msra.mxu1 %v956_v3 }
  0x49   : > { %923 = vmatmul.msk.bf16.vlgmr.msrb.gmra.mxu0 %vm276_vm0, %v922_v8  ;;  %924 = vmatmul.msk.bf16.vlgmr.msrb.gmra.mxu1 %vm276_vm0, %v921_v9 }
  0x4a   : > { %928 = vmatmul.msk.bf16.vlgmr.msrb.gmra.mxu2 %vm276_vm0, %v927_v10  ;;  %929 = vmatmul.msk.bf16.vlgmr.msrb.gmra.mxu3 %vm276_vm0, %v926_v11 }
  0x4b   : > { %661 = vmatpush.bf16.msrb.mxu2 %v959_v0  ;;  %677 = vmatpush.bf16.msrb.mxu3 %v957_v1 }
  0x4c   : > { %609 = vmatpush.bf16.msrb.mxu0 %v959_v0  ;;  %625 = vmatpush.bf16.msrb.mxu1 %v957_v1 }
  0x4f   : > { %662 = vmatpush.bf16.msrb.mxu2 %v958_v2  ;;  %678 = vmatpush.bf16.msrb.mxu3 %v956_v3 }
  0x50   : > { %610 = vmatpush.bf16.msrb.mxu0 %v958_v2  ;;  %626 = vmatpush.bf16.msrb.mxu1 %v956_v3 }
  0x59   : > { %933 = vmatmul.msk.bf16.vlgmr.msra.gmra.mxu0 %vm276_vm0, %v932_v12  ;;  %934 = vmatmul.msk.bf16.vlgmr.msra.gmra.mxu1 %vm276_vm0, %v931_v13 }
  0x5a   : > { %938 = vmatmul.msk.bf16.vlgmr.msra.gmra.mxu2 %vm276_vm0, %v937_v14  ;;  %939 = vmatmul.msk.bf16.vlgmr.msra.gmra.mxu3 %vm276_vm0, %v936_v15 }
  0x69   : > { %943 = vmatmul.msk.bf16.vlgmr.msrb.gmra.mxu0 %vm276_vm0, %v942_v16  ;;  %944 = vmatmul.msk.bf16.vlgmr.msrb.gmra.mxu1 %vm276_vm0, %v941_v17 }
  0x6a   : > { %948 = vmatmul.msk.bf16.vlgmr.msrb.gmra.mxu2 %vm276_vm0, %v947_v18  ;;  %949 = vmatmul.msk.bf16.vlgmr.msrb.gmra.mxu3 %vm276_vm0, %v946_v19 }
  0xb6   : > { %v289_v20 = vpop.f32.mrf.mxu0  ;;  %v317_v21 = vpop.f32.mrf.mxu1 }
  0xb7   : > { %v318_v22 = vadd.f32 %v317_v21, %v289_v20 }
  0xb9   : > { %321 = vst [vmem:[%s1405_s26] sm:$0xff] %v318_v22  ;;  %v329_v38 = vmul.f32 %v318_v22, %v318_v22  ;;  %v322_v42 = vrot.slane %v318_v22, 4 }
  0xbb   : > { %v330_v47 = vrot.slane %v329_v38, 4  ;;  %v323_v52 = vadd.f32 %v322_v42, %v318_v22 }
  0xbd   : > { %v352_v23 = vpop.f32.mrf.mxu2  ;;  %v368_v24 = vpop.f32.mrf.mxu3  ;;  %v331_v55 = vadd.f32 %v330_v47, %v329_v38  ;;  %v324_v0 = vrot.slane %v323_v52, 2 }
  0xbe   : > { %v369_v25 = vadd.f32 %v368_v24, %v352_v23  ;;  %v291_v26 = vpop.f32.mrf.mxu0  ;;  %v319_v27 = vpop.f32.mrf.mxu1 }
  0xbf   : > { %v332_v6 = vrot.slane %v331_v55, 2  ;;  %v325_v15 = vadd.f32 %v324_v0, %v323_v52 }
  0xc0   : > { %920 = vst [vmem:[%s1405_s26 + $0x8] sm:$0xff] %v369_v25  ;;  %v381_v39 = vmul.f32 %v369_v25, %v369_v25  ;;  %v374_v43 = vrot.slane %v369_v25, 4 }
  0xc1   : > { %v333_v21 = vadd.f32 %v332_v6, %v331_v55 }
  0xc2   : > { %v382_v49 = vrot.slane %v381_v39, 4  ;;  %v375_v53 = vadd.f32 %v374_v43, %v369_v25 }
  0xc3   : > { %v334_v38 = vrot.slane %v333_v21, 1 }
  0xc4   : > { %v383_v58 = vadd.f32 %v382_v49, %v381_v39  ;;  %v376_v1 = vrot.slane %v375_v53, 2 }
  0xc5   : > { %v354_v28 = vpop.f32.mrf.mxu2  ;;  %v370_v29 = vpop.f32.mrf.mxu3 }
  0xc6   : > { %v404_v30 = vpop.f32.mrf.mxu0  ;;  %v420_v31 = vpop.f32.mrf.mxu1  ;;  %v384_v9 = vrot.slane %v383_v58, 2  ;;  %v377_v16 = vadd.f32 %v376_v1, %v375_v53  ;;  %v326_v29 = vrot.slane %v325_v15, 1 }
  0xc7   : > { %v421_v32 = vadd.f32 %v420_v31, %v404_v30 }
  0xc8   : > { %v385_v22 = vadd.f32 %v384_v9, %v383_v58  ;;  %v378_v30 = vrot.slane %v377_v16, 1 }
  0xc9   : > { %925 = vst [vmem:[%s1405_s26 + $0x10] sm:$0xff] %v421_v32  ;;  %v433_v44 = vmul.f32 %v421_v32, %v421_v32  ;;  %v426_v50 = vrot.slane %v421_v32, 4 }
  0xca   : > { %v386_v39 = vrot.slane %v385_v22, 1  ;;  %v379_v47 = vadd.f32 %v378_v30, %v377_v16 }
  0xcb   : > { %v434_v54 = vrot.slane %v433_v44, 4  ;;  %v427_v59 = vadd.f32 %v426_v50, %v421_v32 }
  0xcc   : > { %v387_v55 = vadd.f32 %v386_v39, %v385_v22 }
  0xcd   : > { %v456_v33 = vpop.f32.mrf.mxu2  ;;  %v472_v34 = vpop.f32.mrf.mxu3  ;;  %v435_v2 = vadd.f32 %v434_v54, %v433_v44  ;;  %v428_v10 = vrot.slane %v427_v59, 2  ;;  %v335_v54 = vadd.f32 %v334_v38, %v333_v21 }
  0xce   : > { %v473_v35 = vadd.f32 %v472_v34, %v456_v33  ;;  %v406_v36 = vpop.f32.mrf.mxu0  ;;  %v422_v37 = vpop.f32.mrf.mxu1 }
  0xcf   : > { %v436_v17 = vrot.slane %v435_v2, 2  ;;  %v429_v23 = vadd.f32 %v428_v10, %v427_v59  ;;  %v388_v10 = vadd.f32 %v387_v55, %v335_v54 }
  0xd0   : > { %930 = vst [vmem:[%s1405_s26 + $0x18] sm:$0xff] %v473_v35  ;;  %v485_v51 = vmul.f32 %v473_v35, %v473_v35  ;;  %v478_v56 = vrot.slane %v473_v35, 4 }
  0xd1   : > { %v437_v31 = vadd.f32 %v436_v17, %v435_v2 }
  0xd2   : > { %v486_v60 = vrot.slane %v485_v51, 4  ;;  %v479_v7 = vadd.f32 %v478_v56, %v473_v35 }
  0xd4   : > { %v487_v13 = vadd.f32 %v486_v60, %v485_v51  ;;  %v480_v19 = vrot.slane %v479_v7, 2 }
  0xd5   : > { %v458_v40 = vpop.f32.mrf.mxu2  ;;  %v474_v41 = vpop.f32.mrf.mxu3 }
  0xd6   : > { %v508_v45 = vpop.f32.mrf.mxu0  ;;  %v524_v46 = vpop.f32.mrf.mxu1  ;;  %v488_v25 = vrot.slane %v487_v13, 2  ;;  %v481_v35 = vadd.f32 %v480_v19, %v479_v7  ;;  %v430_v40 = vrot.slane %v429_v23, 1 }
  0xd7   : > { %v525_v48 = vadd.f32 %v524_v46, %v508_v45  ;;  %v327_v46 = vadd.f32 %v326_v29, %v325_v15 }
  0xd8   : > { %v489_v42 = vadd.f32 %v488_v25, %v487_v13  ;;  %v482_v50 = vrot.slane %v481_v35, 1  ;;  %v431_v56 = vadd.f32 %v430_v40, %v429_v23 }
  0xd9   : > { %935 = vst [vmem:[%s1405_s26 + $0x20] sm:$0xff] %v525_v48  ;;  %v537_v57 = vmul.f32 %v525_v48, %v525_v48  ;;  %v530_v61 = vrot.slane %v525_v48, 4  ;;  %v380_v0 = vadd.f32 %v379_v47, %v327_v46 }
  0xda   : > { %v490_v58 = vrot.slane %v489_v42, 1  ;;  %v483_v6 = vadd.f32 %v482_v50, %v481_v35 }
  0xdb   : > { %v538_v8 = vrot.slane %v537_v57, 4  ;;  %v531_v14 = vadd.f32 %v530_v61, %v525_v48  ;;  %v438_v48 = vrot.slane %v437_v31, 1 }
  0xdc   : > { %v491_v15 = vadd.f32 %v490_v58, %v489_v42 }
  0xdd   : > { %v560_v62 = vpop.f32.mrf.mxu2  ;;  %v576_v63 = vpop.f32.mrf.mxu3  ;;  %v539_v20 = vadd.f32 %v538_v8, %v537_v57  ;;  %v532_v26 = vrot.slane %v531_v14, 2  ;;  %v439_v1 = vadd.f32 %v438_v48, %v437_v31 }
  0xde   : > { %v577_v3 = vadd.f32 %v576_v63, %v560_v62  ;;  %v510_v4 = vpop.f32.mrf.mxu0  ;;  %v526_v5 = vpop.f32.mrf.mxu1 }
  0xdf   : > { %v540_v36 = vrot.slane %v539_v20, 2  ;;  %v533_v43 = vadd.f32 %v532_v26, %v531_v14  ;;  %v432_v14 = vadd.f32 %v431_v56, %v380_v0 }
  0xe0   : > { %940 = vst [vmem:[%s1405_s26 + $0x28] sm:$0xff] %v577_v3  ;;  %v582_v11 = vrot.slane %v577_v3, 4  ;;  %v589_v12 = vmul.f32 %v577_v3, %v577_v3 }
  0xe1   : > { %v541_v51 = vadd.f32 %v540_v36, %v539_v20  ;;  %v534_v59 = vrot.slane %v533_v43, 1 }
  0xe2   : > { %v590_v18 = vrot.slane %v589_v12, 4  ;;  %v583_v24 = vadd.f32 %v582_v11, %v577_v3 }
  0xe3   : > { %v542_v7 = vrot.slane %v541_v51, 1  ;;  %v535_v16 = vadd.f32 %v534_v59, %v533_v43 }
  0xe4   : > { %v591_v32 = vadd.f32 %v590_v18, %v589_v12  ;;  %v584_v41 = vrot.slane %v583_v24, 2 }
  0xe5   : > { %v562_v27 = vpop.f32.mrf.mxu2  ;;  %v578_v28 = vpop.f32.mrf.mxu3 }
  0xe6   : > { %v612_v33 = vpop.f32.mrf.mxu0  ;;  %v628_v34 = vpop.f32.mrf.mxu1  ;;  %v592_v49 = vrot.slane %v591_v32, 2  ;;  %v585_v57 = vadd.f32 %v584_v41, %v583_v24 }
  0xe7   : > { %v629_v37 = vadd.f32 %v628_v34, %v612_v33 }
  0xe8   : > { %v593_v2 = vadd.f32 %v592_v49, %v591_v32  ;;  %v586_v11 = vrot.slane %v585_v57, 1 }
  0xe9   : > { %945 = vst [vmem:[%s1405_s26 + $0x30] sm:$0xff] %v629_v37  ;;  %v634_v44 = vrot.slane %v629_v37, 4  ;;  %v641_v45 = vmul.f32 %v629_v37, %v629_v37 }
  0xeb   : > { %v635_v52 = vadd.f32 %v634_v44, %v629_v37  ;;  %v642_v53 = vrot.slane %v641_v45, 4 }
  0xed   : > { %v636_v60 = vrot.slane %v635_v52, 2  ;;  %v643_v61 = vadd.f32 %v642_v53, %v641_v45  ;;  %v664_v62 = vpop.f32.mrf.mxu2  ;;  %v680_v63 = vpop.f32.mrf.mxu3 }
  0xee   : > { %v681_v3 = vadd.f32 %v680_v63, %v664_v62  ;;  %v614_v4 = vpop.f32.mrf.mxu0  ;;  %v630_v5 = vpop.f32.mrf.mxu1 }
  0xef   : > { %v637_v8 = vadd.f32 %v636_v60, %v635_v52  ;;  %v644_v9 = vrot.slane %v643_v61, 2 }
  0xf0   : > { %950 = vst [vmem:[%s1405_s26 + $0x38] sm:$0xff] %v681_v3  ;;  %v686_v12 = vrot.slane %v681_v3, 4  ;;  %v693_v13 = vmul.f32 %v681_v3, %v681_v3 }
  0xf1   : > { %v645_v17 = vadd.f32 %v644_v9, %v643_v61 }
  0xf2   : > { %1122 = shalt.err (!%p1119_p10)
}
  0xf3   : > { %s1230_s21 = smov 128   ;;  %s1231_s26 = smov 8   ;;  %v594_v18 = vrot.slane %v593_v2, 1  ;;  %v638_v19 = vrot.slane %v637_v8, 1  ;;  %v687_v20 = vadd.f32 %v686_v12, %v681_v3  ;;  %v694_v21 = vrot.slane %v693_v13, 4 }
  0xf4   : > { %970 = dma.vmem_to_hbm [thread:$0]  (%p1329_p7), %s1422_s6, 1024, %s1424_s7, %s704_s11, %s1230_s21, %s1230_s21, %s1231_s26   ;;  %v440_v22 = vadd.f32 %v439_v1, %v388_v10  ;;  %v484_v23 = vadd.f32 %v483_v6, %v432_v14  ;;  %v543_v24 = vadd.f32 %v542_v7, %v541_v51  ;;  %v587_v25 = vadd.f32 %v586_v11, %v585_v57 }
  0xf5   : > { %v646_v26 = vrot.slane %v645_v17, 1  ;;  %v688_v27 = vrot.slane %v687_v20, 2  ;;  %v695_v28 = vadd.f32 %v694_v21, %v693_v13  ;;  %v666_v31 = vpop.f32.mrf.mxu2  ;;  %v682_v32 = vpop.f32.mrf.mxu3  ;;  %v595_v33 = vadd.f32 %v594_v18, %v593_v2  ;;  %s738_s27 = scalar_lea.hbm %s1513_s3, %s1278_s19  ;;  %s708_s28 = sand.u32 1, %s1278_s19  }
  0xf6   : > { %v492_v29 = vadd.f32 %v491_v15, %v440_v22  ;;  %v536_v30 = vadd.f32 %v535_v16, %v484_v23  ;;  %v639_v34 = vadd.f32 %v638_v19, %v637_v8  ;;  %s751_s11 = scalar_lea.hbm %s1514_s4, %s1278_s19  ;;  %s244_s13 = scalar_lea.vmem [#allocation8], %s1358_s23 }
  0xf7   : > { %v689_v35 = vadd.f32 %v688_v27, %v687_v20  ;;  %v696_v36 = vrot.slane %v695_v28, 2  ;;  %v647_v38 = vadd.f32 %v646_v26, %v645_v17  ;;  %s1451_s14 = sshll.u32 %s244_s13, 4  ;;  %s1453_s10 = sshll.u32 %s738_s27, 4  ;;  %s741_s14 = int_to_ptr.vmem [resolvable:$true] %s1451_s14  ;;  %s743_s10 = int_to_ptr.hbm [resolvable:$true] %s1453_s10 }
  0xf8   : > { %v544_v37 = vadd.f32 %v543_v24, %v492_v29  ;;  %v588_v41 = vadd.f32 %v587_v25, %v536_v30  ;;  %s250_s12 = scalar_lea.vmem [#allocation10], %s1358_s23  ;;  %s1458_s20 = sshll.u32 %s751_s11, 4  ;;  %s756_s20 = int_to_ptr.hbm [resolvable:$true] %s1458_s20 }
  0xf9   : > { %v690_v39 = vrot.slane %v689_v35, 1  ;;  %v697_v40 = vadd.f32 %v696_v36, %v695_v28  ;;  %s1456_s30 = sshll.u32 %s250_s12, 4  ;;  %s709_s19 = scalar_lea.sflag [#allocation9], %s708_s28  ;;  %s754_s30 = int_to_ptr.vmem [resolvable:$true] %s1456_s30 }
  0xfa   : > { %v596_v42 = vadd.f32 %v595_v33, %v544_v37  ;;  %v640_v44 = vadd.f32 %v639_v34, %v588_v41  ;;  %s1137_s5 = sshra.s32 %s743_s10, 4  ;;  %s1143_s24 = scalar_lea.hbm %s1513_s3, 2  ;;  %s1138_s5 = int_to_ptr.hbm [resolvable:$true] %s1137_s5 }
  0xfb   : > { %v698_v43 = vrot.slane %v697_v40, 1  ;;  %v691_v45 = vadd.f32 %v690_v39, %v689_v35  ;;  %s1139_s23 = scalar_lea.hbm %s1138_s5, 1  ;;  %p1144_p3 = scmp.lt.s32.totalorder %s1138_s5, %s1513_s3 }
  0xfc   : > { %v648_v48 = vadd.f32 %v647_v38, %v596_v42  ;;  %p1140_p12 = scmp.ne.s32.totalorder %s1138_s5, %s1139_s23  ;;  %p1145_p5 = scmp.lt.s32.totalorder %s1143_s24, %s1139_s23 }
  0xfd   : > { %v699_v46 = vadd.f32 %v698_v43, %v697_v40  ;;  %v692_v47 = vadd.f32 %v691_v45, %v640_v44 }
  0xfe   : > { %p1141_p13 = pnand %p1140_p12, %p1329_p7  ;;  %p1146_p1 = por %p1145_p5, %p1144_p3 }
  0xff   : > { %701 = vst [vmem:[%s244_s13] sm:$0x1] %v692_v47  ;;  %v700_v49 = vadd.f32 %v699_v46, %v648_v48 }
 0x100   : > { %p1142_p0 = pneg %p1141_p13 }
 0x102   : > { %p1147_p4 = pnand %p1146_p1, %p1142_p0 }
 0x104   : > { %1150 = shalt.err (!%p1147_p4)
}
 0x105   : > { %971 = dma.vmem_to_hbm [thread:$0]  (%p1329_p7), %s741_s14, 16, %s743_s10, %s709_s19   ;;  %702 = vst [vmem:[%s250_s12] sm:$0x1] %v700_v49 }
 0x106   : > { %s1165_s28 = sshra.s32 %s756_s20, 4  ;;  %s1171_s13 = scalar_lea.hbm %s1514_s4, 2  ;;  %s1166_s28 = int_to_ptr.hbm [resolvable:$true] %s1165_s28 }
 0x107   : > { %s1167_s6 = scalar_lea.hbm %s1166_s28, 1  ;;  %p1172_p2 = scmp.lt.s32.totalorder %s1166_s28, %s1514_s4 }
 0x108   : > { %p1168_p8 = scmp.ne.s32.totalorder %s1166_s28, %s1167_s6  ;;  %p1173_p10 = scmp.lt.s32.totalorder %s1171_s13, %s1167_s6 }
 0x10a   : > { %p1169_p11 = pnand %p1168_p8, %p1329_p7  ;;  %p1174_p12 = por %p1173_p10, %p1172_p2 }
 0x10c   : > { %p1170_p9 = pneg %p1169_p11 }
 0x10e   : > { %p1175_p13 = pnand %p1174_p12, %p1170_p9 }
 0x110   : > { %1178 = shalt.err (!%p1175_p13)
}
 0x111   : > { %972 = dma.vmem_to_hbm [thread:$0]  (%p1329_p7), %s754_s30, 16, %s756_s20, %s709_s19  }
 0x112 PF: > { %s767_s14 = sand.u32 1, %s1213_s15   ;;  %p1525_p0 = scmp.ge.s32.totalorder %s1225_s18, 2 }
 0x113   : > { %s768_s10 = scalar_lea.sflag [#allocation4], %s767_s14 }
 0x114   : > { %p985_p3 = pnand %p1525_p0, %p1294_p6 }
 0x116   : > { %p986_p5 = pneg %p985_p3 }
 0x118   : > { %1204 = dma.done.wait (%p986_p5), %s768_s10, 1024  }
 0x119   : > { %1206 = vsyncadd (%p986_p5), %s768_s10, 4294966272  ;;  %s1526_s12 = sadd.s32 4294967294, %s1225_s18  }
 0x11a   : > { %s777_s9 = sand.u32 1, %s1526_s12  }
 0x11b   : > { %s778_s21 = scalar_lea.sflag [#allocation9], %s777_s9 }
 0x11c   : > { %1208 = dma.done.wait (%p986_p5), %s778_s21, 32  }
 0x11d   : > { %1210 = vsyncadd (%p986_p5), %s778_s21, 4294967264  ;;  %p22_p7 = scmp.ge.s32.totalorder %s1312_s29, 4   ;;  %s1527_s15 = smov %s1217_s16 }
 0x11e   : > { %s1528_s16 = smov %s1221_s17  ;;  %s1529_s17 = smov %s1325_s8 }
 0x11f   : > { %s1530_s18 = smov %s1312_s29  ;;  %24 = sbr.rel (!%p22_p7) target bundleno = 8 (0x8), region = 125 }
 0x124   :  { %792 = vsyncpa [#allocation3], 1 }
 0x125   :  { %794 = vsyncpa [#allocation3 + $0x1], 1 }
 0x126   :  { %795 = vsyncpa [#allocation6], 1 }
 0x127   :  { %796 = vsyncpa [#allocation4], 1 }
 0x128   :  { %798 = vsyncpa [#allocation4 + $0x1], 1 }
 0x129   :  { %799 = vsyncpa [#allocation9], 1 }
 0x12a   :  { %801 = vsyncpa [#allocation9 + $0x1], 1 }

</bundles_post_ra>
